<compile_context>
chip_gen: v7x
topology: tpu7x:2x2x1
jax: 0.10.0
libtpu: 0.0.40
codegen_flags: <defaults>
</compile_context>

<pallas_src>
import jax
import jax.numpy as jnp
from jax import lax
from jax.experimental import pallas as pl
from jax.experimental.pallas import tpu as pltpu

LN_EPS = 1e-5  # nn.LayerNorm default

_ROW_TILE_CANDIDATES = (4096, 2048, 1024, 512, 256, 128, 64, 32, 16, 8)


def _cdiv(a, b):
    return -(-a // b)


def _round_up(a, b):
    return _cdiv(a, b) * b


# --------------------------- hardware / feature queries ---------------------------
def _vmem_capacity_bytes():
    try:
        return int(pltpu.get_tpu_info().vmem_capacity_bytes)
    except Exception:
        return 64 * 1024 * 1024  # conservative fallback: v7x physical VMEM per TC


def _detect_buffered():
    # Narrow feature-detect (construction only): unsupported pipeline_mode fails here,
    # real lowering/OOM errors later are NOT swallowed.
    if not hasattr(pl, "Buffered"):
        return False
    try:
        pl.BlockSpec((8, 128), lambda i: (0, 0), pipeline_mode=pl.Buffered(1))
        return True
    except Exception:
        return False


_HAS_BUFFERED = _detect_buffered()


# ----------------------------------- kernels -------------------------------------
def _fused_kernel(x_ref, w_ref, p_ref, o_ref):
    """Resident-W path: single K tile, no accumulator scratch, direct epilogue."""
    h = jnp.dot(x_ref[...], w_ref[...], preferred_element_type=jnp.float32)
    h = h + p_ref[0:1, :]                      # bias (f32)
    h = h * jax.nn.sigmoid(h)                  # SiLU (exp on the EUP slot)
    mean = jnp.mean(h, axis=-1, keepdims=True)
    h = h - mean                               # in-place value chain: one live f32 temp
    var = jnp.mean(h * h, axis=-1, keepdims=True)
    inv = lax.rsqrt(var + LN_EPS)              # EUP rsqrt, once per row
    o_ref[...] = (h * (inv * p_ref[1:2, :]) + p_ref[2:3, :]).astype(o_ref.dtype)


def _make_streamed_kernel(d_in, block_k):
    """Streamed-K path: f32 VMEM accumulator, epilogue on the last K step.

    Handles a ragged K tail without any wrapper-side padding copy of x/W by
    zero-masking both operands in-kernel (garbage never reaches the MXU).
    """
    ragged_k = (d_in % block_k) != 0

    def kernel(x_ref, w_ref, p_ref, o_ref, acc_ref):
        k = pl.program_id(1)
        x = x_ref[...]
        w = w_ref[...]
        if ragged_k:
            valid = d_in - k * block_k         # >= block_k for all but the last tile
            col = lax.broadcasted_iota(jnp.int32, (1, block_k), 1)
            row = lax.broadcasted_iota(jnp.int32, (block_k, 1), 0)
            x = jnp.where(col < valid, x, jnp.zeros_like(x))
            w = jnp.where(row < valid, w, jnp.zeros_like(w))
        part = jnp.dot(x, w, preferred_element_type=jnp.float32)

        @pl.when(k == 0)
        def _():
            acc_ref[...] = part                # no zeros + += round trip

        @pl.when(k > 0)
        def _():
            acc_ref[...] += part

        @pl.when(k == pl.num_programs(1) - 1)
        def _():
            h = acc_ref[...] + p_ref[0:1, :]
            h = h * jax.nn.sigmoid(h)
            mean = jnp.mean(h, axis=-1, keepdims=True)
            h = h - mean
            var = jnp.mean(h * h, axis=-1, keepdims=True)
            inv = lax.rsqrt(var + LN_EPS)
            o_ref[...] = (h * (inv * p_ref[1:2, :]) + p_ref[2:3, :]).astype(o_ref.dtype)

    return kernel


# ------------------------------ tile-size selection ------------------------------
def _vmem_estimate(block_rows, block_k, d_emb, in_bytes, out_bytes, w_buffers, use_acc):
    x_bufs = 2 * block_rows * block_k * in_bytes        # double-buffered activation tile
    w_bufs = w_buffers * block_k * d_emb * in_bytes     # 1 buffer when resident+Buffered(1)
    o_bufs = 2 * block_rows * d_emb * out_bytes         # double-buffered output tile
    acc = block_rows * d_emb * 4 if use_acc else 0      # f32 accumulator (streamed K only)
    temps = block_rows * d_emb * 4                      # one live f32 epilogue temporary
    params = 3 * d_emb * 4
    return x_bufs + w_bufs + o_bufs + acc + temps + params


def _pick_block_rows(n, block_k, d_emb, in_bytes, out_bytes, w_buffers, use_acc, budget):
    cap = _round_up(max(n, 8), 8)
    if n >= 16:
        # Keep >= 2 row tiles so the "parallel" axis can shard across v7x's 2 TensorCores.
        cap = min(cap, _round_up(_cdiv(n, 2), 8))
    for br in _ROW_TILE_CANDIDATES:
        if br > cap:
            continue
        if _vmem_estimate(br, block_k, d_emb, in_bytes, out_bytes, w_buffers, use_acc) <= budget:
            return br
    return 8


# ------------------------------------ wrapper ------------------------------------
def initial_embedding(x, w, b, gamma, beta, *, block_rows=None, block_k=None):
    """Fused Linear -> SiLU -> LayerNorm.

    x: [N, input_dim]; w: [input_dim, embedding_dim]; b/gamma/beta: [embedding_dim].
    Returns [N, embedding_dim] in x.dtype.
    """
    n, d_in = x.shape
    d_in_w, d_emb = w.shape
    if d_in_w != d_in:
        raise ValueError("weight / input feature-dim mismatch")

    out_dtype = x.dtype
    w = w.astype(x.dtype)                                     # native MXU operand dtype
    params = jnp.stack([b, gamma, beta]).astype(jnp.float32)  # (3, d_emb) f32 epilogue params

    in_bytes = jnp.dtype(x.dtype).itemsize
    out_bytes = jnp.dtype(out_dtype).itemsize

    # Per-generation VMEM policy (64 MiB v7x, 128 MiB v5e/v6e physical VMEM).
    vmem_cap = _vmem_capacity_bytes()
    soft_budget = vmem_cap // 2
    limit_cap = (vmem_cap * 3) // 4
    weight_budget = vmem_cap // 4     # resident-W budget: ~16 MiB v7x, ~32 MiB v5e/v6e

    # K policy: keep W fully resident whenever it fits the weight budget (kills the
    # per-row-tile W re-fetch and the K grid axis); only stream K otherwise.
    if block_k is not None:
        block_k = _round_up(block_k, 128)
        resident_w = block_k >= d_in
    else:
        resident_w = d_in * d_emb * in_bytes <= weight_budget

    if resident_w:
        block_k = d_in
        k_tiles = 1
    else:
        if block_k is None:
            # Low-VMEM parts (v7x): smaller K tile, spend the reclaimed VMEM on rows.
            block_k = 512 if vmem_cap <= 64 * 1024 * 1024 else 1024
        block_k = min(block_k, _round_up(d_in, 128))
        k_tiles = _cdiv(d_in, block_k)

    w_buffers = 1 if (resident_w and _HAS_BUFFERED) else 2
    use_acc = not resident_w

    if block_rows is None:
        block_rows = _pick_block_rows(n, block_k, d_emb, in_bytes, out_bytes,
                                      w_buffers, use_acc, soft_budget)
    if block_rows % 8 != 0:
        raise ValueError("block_rows must be a multiple of 8")
    m_tiles = _cdiv(n, block_rows)            # ragged last tile: no jnp.pad copy of x

    est = _vmem_estimate(block_rows, block_k, d_emb, in_bytes, out_bytes, w_buffers, use_acc)
    vmem_limit = int(min(limit_cap, max(2 * est, 32 * 1024 * 1024)))  # headroom for Mosaic scratch

    if resident_w:
        def _inv(shape):
            # Grid-invariant input: one VMEM buffer is enough.
            if _HAS_BUFFERED:
                return pl.BlockSpec(shape, lambda i: (0, 0), pipeline_mode=pl.Buffered(1))
            return pl.BlockSpec(shape, lambda i: (0, 0))

        call = pl.pallas_call(
            _fused_kernel,
            out_shape=jax.ShapeDtypeStruct((n, d_emb), out_dtype),
            grid_spec=pltpu.PrefetchScalarGridSpec(
                num_scalar_prefetch=0,
                grid=(m_tiles,),
                in_specs=[
                    pl.BlockSpec((block_rows, d_in), lambda i: (i, 0)),
                    _inv((d_in, d_emb)),          # resident weight, single-buffered
                    _inv((3, d_emb)),
                ],
                # TODO(synk): for embedding_dim < 128, repack the epilogue/output into a
                # lane-dense (rows*d_emb/128, 128) slab to avoid masked vst.msk stores.
                out_specs=pl.BlockSpec((block_rows, d_emb), lambda i: (i, 0)),
            ),
            compiler_params=pltpu.CompilerParams(
                dimension_semantics=("parallel",),
                vmem_limit_bytes=vmem_limit,
            ),
        )
    else:
        def _inv2(shape):
            if _HAS_BUFFERED:
                return pl.BlockSpec(shape, lambda i, k: (0, 0), pipeline_mode=pl.Buffered(1))
            return pl.BlockSpec(shape, lambda i, k: (0, 0))

        call = pl.pallas_call(
            _make_streamed_kernel(d_in, block_k),
            out_shape=jax.ShapeDtypeStruct((n, d_emb), out_dtype),
            grid_spec=pltpu.PrefetchScalarGridSpec(
                num_scalar_prefetch=0,
                grid=(m_tiles, k_tiles),          # reduction axis innermost
                in_specs=[
                    pl.BlockSpec((block_rows, block_k), lambda i, k: (i, k)),
                    pl.BlockSpec((block_k, d_emb), lambda i, k: (k, 0)),   # streamed W
                    _inv2((3, d_emb)),
                ],
                out_specs=pl.BlockSpec((block_rows, d_emb), lambda i, k: (i, 0)),
                scratch_shapes=[pltpu.VMEM((block_rows, d_emb), jnp.float32)],
            ),
            compiler_params=pltpu.CompilerParams(
                dimension_semantics=("parallel", "arbitrary"),
                vmem_limit_bytes=vmem_limit,
            ),
        )

    return call(x, w, params)


def initial_embedding_ref(x, w, b, gamma, beta):
    """Pure-JAX reference matching the PyTorch module (f32)."""
    h = x.astype(jnp.float32) @ w.astype(jnp.float32) + b
    h = h * jax.nn.sigmoid(h)
    mean = jnp.mean(h, axis=-1, keepdims=True)
    var = jnp.mean((h - mean) ** 2, axis=-1, keepdims=True)
    return (h - mean) / jnp.sqrt(var + LN_EPS) * gamma + beta


if __name__ == "__main__":
    key = jax.random.PRNGKey(0)
    kx, kw, kb, kg, kbeta = jax.random.split(key, 5)

    # Small-but-representative shapes: N "nodes" with input_dim features -> embedding_dim.
    # N is NOT divisible by the row tile, exercising the ragged (no-pad) last tile.
    N, INPUT_DIM, EMB_DIM = 200, 48, 128

    x = jax.random.normal(kx, (N, INPUT_DIM), dtype=jnp.float32)
    w = jax.random.normal(kw, (INPUT_DIM, EMB_DIM), dtype=jnp.float32) * 0.1
    b = jax.random.normal(kb, (EMB_DIM,), dtype=jnp.float32) * 0.1
    gamma = 1.0 + 0.05 * jax.random.normal(kg, (EMB_DIM,), dtype=jnp.float32)
    beta = 0.05 * jax.random.normal(kbeta, (EMB_DIM,), dtype=jnp.float32)

    # 1) Resident-W f32 path with ragged row tiles.
    out = jax.block_until_ready(initial_embedding(x, w, b, gamma, beta))
    ref = initial_embedding_ref(x, w, b, gamma, beta)
    assert out.shape == (N, EMB_DIM)
    assert jnp.allclose(out, ref, atol=1e-4, rtol=1e-4), "f32 mismatch vs reference"

    # 2) bf16 operand path (MXU-native operands, f32 accumulation + f32 epilogue).
    N2 = 256
    x2 = jax.random.normal(jax.random.PRNGKey(1), (N2, INPUT_DIM), dtype=jnp.float32)
    out_bf16 = jax.block_until_ready(
        initial_embedding(x2.astype(jnp.bfloat16), w.astype(jnp.bfloat16), b, gamma, beta)
    )
    ref2 = initial_embedding_ref(x2, w, b, gamma, beta)
    assert out_bf16.shape == (N2, EMB_DIM)
    assert out_bf16.dtype == jnp.bfloat16
    assert jnp.allclose(out_bf16.astype(jnp.float32), ref2, atol=1e-1, rtol=1e-1), \
        "bf16 mismatch vs f32 reference"

    # 3) Streamed-K path with a ragged K tail (forced small block_k to exercise masking).
    N3, DIN3 = 96, 300
    kx3, kw3 = jax.random.split(jax.random.PRNGKey(2), 2)
    x3 = jax.random.normal(kx3, (N3, DIN3), dtype=jnp.float32)
    w3 = jax.random.normal(kw3, (DIN3, EMB_DIM), dtype=jnp.float32) * 0.05
    out3 = jax.block_until_ready(initial_embedding(x3, w3, b, gamma, beta, block_k=128))
    ref3 = initial_embedding_ref(x3, w3, b, gamma, beta)
    assert out3.shape == (N3, EMB_DIM)
    assert jnp.allclose(out3, ref3, atol=2e-3, rtol=2e-3), "streamed-K mismatch vs reference"

    print("KERNEL_OK")
</pallas_src>

<mosaic_0001>
module attributes {stable_mosaic.version = 11 : i64} {
  func.func @_fused_kernel(%arg0: i32, %arg1: memref<64x48xf32, #tpu.memory_space<vmem>>, %arg2: memref<48x128xf32, #tpu.memory_space<vmem>>, %arg3: memref<3x128xf32, #tpu.memory_space<vmem>>, %arg4: memref<64x128xf32, #tpu.memory_space<vmem>>) attributes {dimension_semantics = [#tpu.dimension_semantics<parallel>], iteration_bounds = array<i64: 4>, scalar_prefetch = 0 : i64, scratch_operands = 0 : i64, tpu.core_type = #tpu.core_type<tc>, window_params = [{transform_indices = @transform_0, window_bounds = array<i64: 64, 48>}, {pipeline_mode = #tpu.pipeline_mode<synchronous>, transform_indices = @transform_1, window_bounds = array<i64: 48, 128>}, {pipeline_mode = #tpu.pipeline_mode<synchronous>, transform_indices = @transform_2, window_bounds = array<i64: 3, 128>}, {transform_indices = @transform_3, window_bounds = array<i64: 64, 128>}]} {
    %c0 = arith.constant 0 : index
    %c0_0 = arith.constant 0 : index
    %0 = vector.load %arg1[%c0, %c0_0] : memref<64x48xf32, #tpu.memory_space<vmem>>, vector<64x48xf32>
    %c0_1 = arith.constant 0 : index
    %c0_2 = arith.constant 0 : index
    %1 = vector.load %arg2[%c0_1, %c0_2] : memref<48x128xf32, #tpu.memory_space<vmem>>, vector<48x128xf32>
    %cst = arith.constant dense<0.000000e+00> : vector<64x128xf32>
    %2 = tpu.matmul %0, %1, %cst {dimension_numbers = #tpu.dot_dimension_numbers<[1], [0], [0], [1], [0, 0, 1, 1], [], []>} : vector<64x48xf32>, vector<48x128xf32>, vector<64x128xf32> -> vector<64x128xf32>
    %c0_3 = arith.constant 0 : index
    %c0_4 = arith.constant 0 : index
    %3 = vector.load %arg3[%c0_3, %c0_4] : memref<3x128xf32, #tpu.memory_space<vmem>>, vector<1x128xf32>
    %4 = vector.broadcast %3 : vector<1x128xf32> to vector<64x128xf32>
    %5 = arith.addf %2, %4 : vector<64x128xf32>
    %6 = arith.negf %5 : vector<64x128xf32>
    %7 = math.exp %6 : vector<64x128xf32>
    %cst_5 = arith.constant 1.000000e+00 : f32
    %8 = vector.broadcast %cst_5 : f32 to vector<64x128xf32>
    %9 = arith.addf %8, %7 : vector<64x128xf32>
    %10 = arith.divf %8, %9 : vector<64x128xf32>
    %11 = arith.mulf %5, %10 : vector<64x128xf32>
    %cst_6 = arith.constant dense<0.000000e+00> : vector<64xf32>
    %12 = vector.multi_reduction <add>, %11, %cst_6 [1] : vector<64x128xf32> to vector<64xf32>
    %13 = vector.shape_cast %12 : vector<64xf32> to vector<64x1xf32>
    %cst_7 = arith.constant 1.280000e+02 : f32
    %14 = vector.broadcast %cst_7 : f32 to vector<64x1xf32>
    %15 = arith.divf %13, %14 : vector<64x1xf32>
    %16 = vector.broadcast %15 : vector<64x1xf32> to vector<64x128xf32>
    %17 = arith.subf %11, %16 : vector<64x128xf32>
    %18 = arith.mulf %17, %17 : vector<64x128xf32>
    %cst_8 = arith.constant dense<0.000000e+00> : vector<64xf32>
    %19 = vector.multi_reduction <add>, %18, %cst_8 [1] : vector<64x128xf32> to vector<64xf32>
    %20 = vector.shape_cast %19 : vector<64xf32> to vector<64x1xf32>
    %cst_9 = arith.constant 1.280000e+02 : f32
    %21 = vector.broadcast %cst_9 : f32 to vector<64x1xf32>
    %22 = arith.divf %20, %21 : vector<64x1xf32>
    %cst_10 = arith.constant 9.99999974E-6 : f32
    %23 = vector.broadcast %cst_10 : f32 to vector<64x1xf32>
    %24 = arith.addf %22, %23 : vector<64x1xf32>
    %25 = math.rsqrt %24 : vector<64x1xf32>
    %c1 = arith.constant 1 : index
    %c0_11 = arith.constant 0 : index
    %26 = vector.load %arg3[%c1, %c0_11] : memref<3x128xf32, #tpu.memory_space<vmem>>, vector<1x128xf32>
    %27 = vector.broadcast %25 : vector<64x1xf32> to vector<64x128xf32>
    %28 = vector.broadcast %26 : vector<1x128xf32> to vector<64x128xf32>
    %29 = arith.mulf %27, %28 : vector<64x128xf32>
    %30 = arith.mulf %17, %29 : vector<64x128xf32>
    %c2 = arith.constant 2 : index
    %c0_12 = arith.constant 0 : index
    %31 = vector.load %arg3[%c2, %c0_12] : memref<3x128xf32, #tpu.memory_space<vmem>>, vector<1x128xf32>
    %32 = vector.broadcast %31 : vector<1x128xf32> to vector<64x128xf32>
    %33 = arith.addf %30, %32 : vector<64x128xf32>
    %c0_13 = arith.constant 0 : index
    %c0_14 = arith.constant 0 : index
    %34 = vector.load %arg4[%c0_13, %c0_14] : memref<64x128xf32, #tpu.memory_space<vmem>>, vector<64x128xf32>
    tpu.vector_store %arg4[%c0_13, %c0_14], %33 {strides = array<i32>} : memref<64x128xf32, #tpu.memory_space<vmem>>, vector<64x128xf32>,
    return
  }
  func.func @transform_0(%arg0: i32) -> (i32, i32) {
    %c0_i32 = arith.constant 0 : i32
    %c0_i32_0 = arith.constant 0 : i32
    return %arg0, %c0_i32 : i32, i32
  }
  func.func @transform_1(%arg0: i32) -> (i32, i32) {
    %c0_i32 = arith.constant 0 : i32
    %c0_i32_0 = arith.constant 0 : i32
    %c0_i32_1 = arith.constant 0 : i32
    return %c0_i32, %c0_i32_0 : i32, i32
  }
  func.func @transform_2(%arg0: i32) -> (i32, i32) {
    %c0_i32 = arith.constant 0 : i32
    %c0_i32_0 = arith.constant 0 : i32
    %c0_i32_1 = arith.constant 0 : i32
    return %c0_i32, %c0_i32_0 : i32, i32
  }
  func.func @transform_3(%arg0: i32) -> (i32, i32) {
    %c0_i32 = arith.constant 0 : i32
    %c0_i32_0 = arith.constant 0 : i32
    return %arg0, %c0_i32 : i32, i32
  }
}

</mosaic_0001>

<bundles_post_ra>
// kernel: tpu_custom_call.1
= control target key start
LH: loop header
LB: loop body
LE: loop exit
PB: predicated region body
PF: predicated region fallthrough
CT: control target
= control target key end

     0   :  { %8 = vsyncpa [#allocation3], 0  ;;  %s1084_s0 = inlined_call_operand.vmem [shape: f32[200,48], index: 0, kind: input, shape index: {}]   ;;  %s1085_s1 = inlined_call_operand.vmem [shape: f32[48,128], index: 1, kind: input, shape index: {}]   ;;  %s1086_s2 = inlined_call_operand.vmem [shape: f32[3,128], index: 2, kind: input, shape index: {}]   ;;  %s1087_s3 = inlined_call_operand.hbm [shape: f32[200,128], index: 3, kind: output, shape index: {}]  }
   0x1   :  { %10 = vsyncpa [#allocation3 + $0x1], 0  ;;  %s873_s12 = smov 0   ;;  %s875_s13 = smov 0  }
   0x2   :  { %s877_s14 = smov 0   ;;  %s879_s15 = smov 0  }
   0x3 LB: > { %s894_s16 = sadd.s32 4294967295, %s848_s15   ;;  %s606_s17 = sadd.s32 4294967294, %s848_s15   ;;  %s848_s15 = sphi %s879_s15, %s1093_s15   ;;  %s844_s14 = sphi %s877_s14, %s1092_s14   ;;  %s840_s13 = sphi %s875_s13, %s1091_s13   ;;  %s836_s12 = sphi %s873_s12, %s1090_s12  }
   0x4   : > { %s898_s18 = sadd.s32 1, %s848_s15   ;;  %s91_s19 = sadd.s32 1, %s844_s14 }
   0x5   : > { %s88_s20 = ssub.s32 %s848_s15, %s898_s18  ;;  %p101_p0 = scmp.ne.s32.totalorder %s844_s14, %s840_s13 }
   0x6   : > { %p89_p1 = scmp.eq.s32.totalorder %s88_s20, 0  ;;  %p102_p2 = scmp.eq.s32.totalorder %s894_s16, 3 }
   0x7   : > { %p107_p3 = scmp.ne.s32.totalorder %s840_s13, %s836_s12  ;;  %p108_p4 = scmp.eq.s32.totalorder %s606_s17, 3 }
   0x8   : > { %s909_s21 = scalar_select %p89_p1, %s844_s14, %s91_s19  }
   0x9   : > { %p911_p5 = por %p102_p2, %p101_p0  ;;  %p915_p6 = por %p108_p4, %p107_p3 }
   0xa   : > { %p609_p7 = scmp.ge.s32.totalorder %s848_s15, 1  ;;  %p149_p8 = scmp.lt.s32.totalorder %s848_s15, 5 }
   0xc   : > { %p150_p9 = pnand %p609_p7, %p149_p8 }
   0xd   : > { %v204_v0 = vld [vmem:[%s1085_s1] sm:$0xff] (!%p150_p9)  ;;  %v205_v1 = vld [vmem:[%s1085_s1 + $0x8] sm:$0xff] (!%p150_p9)  ;;  %v206_v2 = vld [vmem:[%s1085_s1 + $0x10] sm:$0xff] (!%p150_p9)  ;;  %s931_s30 = sshll.u32 (!%p150_p9), %s894_s16, 3  ;;  %vm215_vm0 = vcmask (!%p150_p9), 392192   ;;  %s174_s26 = sand.u32 (!%p150_p9), 1, %s840_s13  }
   0xe   : > { %153 = sbr.rel (%p150_p9) target bundleno = 626 (0x272), region = 32  ;;  %v680_v3 = vpack.c.bf16 (!%p150_p9), %v205_v1, %v204_v0  ;;  %v207_v4 = vld [vmem:[%s1085_s1 + $0x18] sm:$0xff] (!%p150_p9)  ;;  %p182_p10 = scmp.lt.s32.totalorder (!%p150_p9), %s931_s30, 24  ;;  %v208_v6 = vld [vmem:[%s1085_s1 + $0x20] sm:$0xff] (!%p150_p9)  ;;  %v209_v7 = vld [vmem:[%s1085_s1 + $0x28] sm:$0xff] (!%p150_p9) }
   0xf   : > { %v684_v5 = vpack.c.bf16 (!%p150_p9), %v207_v4, %v206_v2  ;;  %v688_v8 = vpack.c.bf16 (!%p150_p9), %v209_v7, %v208_v6  ;;  %v613_v17 = vld [vmem:[%s1086_s2] ss:$0 sm:$0xff] (!%p150_p9)  ;;  %s610_s29 = sshll.u32 (!%p150_p9), %s174_s26, 6  ;;  %s1023_s7 = scalar_lea.sflag (!%p150_p9), [#allocation3], %s174_s26 }
  0x10   : > { %681 = vmatprep.subr.bf16.mxu0 (!%p150_p9), %v680_v3  ;;  %692 = vmatprep.subr.bf16.mxu1 (!%p150_p9), %v680_v3  ;;  %s1004_s6 = scalar_lea.vmem (!%p150_p9), [#allocation2], %s610_s29 }
  0x11   : > { %683 = vmatpush3.bf16.msra.mxu0 (!%p150_p9), %v680_v3  ;;  %695 = vmatpush3.bf16.msra.mxu1 (!%p150_p9), %v680_v3 }
  0x12   : > { %685 = vmatprep.subr.bf16.mxu0 (!%p150_p9), %v684_v5  ;;  %693 = vmatprep.subr.bf16.mxu1 (!%p150_p9), %v684_v5 }
  0x15   : > { %s183_s10 = scalar_select %p182_p10, %s931_s30, 24  ;;  %687 = vmatpush3.bf16.msra.mxu0 %v684_v5  ;;  %696 = vmatpush3.bf16.msra.mxu1 %v684_v5 }
  0x16   : > { %689 = vmatprep.subr.bf16.mxu0 %v688_v8  ;;  %694 = vmatprep.subr.bf16.mxu1 %v688_v8  ;;  %s533_s8 = ssub.s32 (%p911_p5), 25, %s931_s30 }
  0x17   : > { %s612_s11 = sshll.u32 %s183_s10, 3  ;;  %p534_p11 = scmp.lt.s32.totalorder (%p911_p5), %s533_s8, 8 }
  0x18   : > { %s185_s20 = scalar_lea.vmem %s1084_s0, %s612_s11 }
  0x19   : > { %v196_v9 = vld [vmem:[%s185_s20] sm:$0xff]  ;;  %691 = vmatpush3.bf16.msra.mxu0 %v688_v8  ;;  %697 = vmatpush3.bf16.msra.mxu1 %v688_v8  ;;  %v197_v11 = vld [vmem:[%s185_s20 + $0x8] sm:$0xff]  ;;  %v198_v13 = vld [vmem:[%s185_s20 + $0x10] sm:$0xff] }
  0x1a   : > { %v200_v10 = vld [vmem:[%s185_s20 + $0x20] sm:$0xff]  ;;  %668 = vmatprep.mubr.msk.f32.mxu0 %vm215_vm0, %v196_v9  ;;  %v201_v12 = vld [vmem:[%s185_s20 + $0x28] sm:$0xff]  ;;  %v202_v14 = vld [vmem:[%s185_s20 + $0x30] sm:$0xff] }
  0x1b   : > { %674 = vmatprep.mubr.msk.f32.mxu1 %vm215_vm0, %v200_v10  ;;  %v199_v15 = vld [vmem:[%s185_s20 + $0x18] sm:$0xff] }
  0x1c   : > { %669 = vmatmul.mubr.msk.f32.vlgmr.msra.gmra.mrb[0].mxu0 %vm215_vm0, %v197_v11  ;;  %675 = vmatmul.mubr.msk.f32.vlgmr.msra.gmra.mrb[0].mxu1 %vm215_vm0, %v201_v12  ;;  %v203_v16 = vld [vmem:[%s185_s20 + $0x38] sm:$0xff] }
  0x1d   : > { %671 = vmatprep.mubr.msk.f32.mxu0 %vm215_vm0, %v198_v13  ;;  %677 = vmatprep.mubr.msk.f32.mxu1 %vm215_vm0, %v202_v14 }
  0x20   : > { %672 = vmatmul.mubr.msk.f32.gmra.mrb[2].mxu0 %vm215_vm0, %v199_v15  ;;  %678 = vmatmul.mubr.msk.f32.gmra.mrb[2].mxu1 %vm215_vm0, %v203_v16 }
  0xef   : > { %v670_v18 = vpop.f32.mrb[0].mxu0  ;;  %v676_v19 = vpop.f32.mrb[0].mxu1 }
  0xf0   : > { %v312_v20 = vadd.f32 %v670_v18, %v613_v17  ;;  %v332_v21 = vadd.f32 %v676_v19, %v613_v17  ;;  %v306_v22 = vpop.f32.mrb[1].mxu0  ;;  %v326_v23 = vpop.f32.mrb[1].mxu1 }
  0xf1   : > { %v307_v24 = vadd.f32 %v613_v17, %v306_v22  ;;  %v958_v25 = vadd.f32 %v613_v17, %v326_v23 }
  0xf2   : > { %v623_v26 = vmul.f32 -1.442695, %v312_v20  ;;  %v627_v27 = vmul.f32 -1.442695, %v332_v21 }
  0xf3   : > { %v622_v28 = vmul.f32 -1.442695, %v307_v24  ;;  %v626_v29 = vmul.f32 -1.442695, %v958_v25  ;;  %v673_v30 = vpop.f32.mrb[2].mxu0  ;;  %v679_v31 = vpop.f32.mrb[2].mxu1 }
  0xf4   : > { %738 = vpow2.f32 %v623_v26  ;;  %v322_v32 = vadd.f32 %v673_v30, %v613_v17  ;;  %v342_v33 = vadd.f32 %v679_v31, %v613_v17  ;;  %v316_v34 = vpop.f32.mrb[3].mxu0  ;;  %v336_v35 = vpop.f32.mrb[3].mxu1 }
  0xf5   : > { %740 = vpow2.f32 %v627_v27  ;;  %v317_v36 = vadd.f32 %v613_v17, %v316_v34  ;;  %v337_v37 = vadd.f32 %v613_v17, %v336_v35 }
  0xf6   : > { %742 = vpow2.f32 %v622_v28  ;;  %v625_v38 = vmul.f32 -1.442695, %v322_v32  ;;  %v629_v39 = vmul.f32 -1.442695, %v342_v33 }
  0xf7   : > { %744 = vpow2.f32 %v626_v29  ;;  %v624_v40 = vmul.f32 -1.442695, %v317_v36  ;;  %v628_v41 = vmul.f32 -1.442695, %v337_v37 }
  0xf8   : > { %746 = vpow2.f32 %v625_v38 }
  0xf9   : > { %748 = vpow2.f32 %v629_v39 }
  0xfa   : > { %750 = vpow2.f32 %v624_v40 }
  0xfb   : > { %752 = vpow2.f32 %v628_v41 }
  0xfe   : > { %v739_v42 = vpop.eup %738 }
  0xff   : > { %v741_v43 = vpop.eup %740  ;;  %v370_v44 = vadd.f32 1.0, %v739_v42 }
 0x100   : > { %v743_v45 = vpop.eup %742  ;;  %v374_v46 = vadd.f32 1.0, %v741_v43 }
 0x101   : > { %v745_v47 = vpop.eup %744  ;;  %754 = vrcp.f32 %v370_v44  ;;  %v369_v48 = vadd.f32 1.0, %v743_v45 }
 0x102   : > { %v747_v49 = vpop.eup %746  ;;  %756 = vrcp.f32 %v374_v46  ;;  %v373_v51 = vadd.f32 1.0, %v745_v47 }
 0x103   : > { %v749_v50 = vpop.eup %748  ;;  %758 = vrcp.f32 %v369_v48  ;;  %v372_v52 = vadd.f32 1.0, %v747_v49 }
 0x104   : > { %v751_v53 = vpop.eup %750  ;;  %v376_v57 = vadd.f32 1.0, %v749_v50 }
 0x105   : > { %v753_v54 = vpop.eup %752  ;;  %760 = vrcp.f32 %v372_v52  ;;  %v371_v55 = vadd.f32 1.0, %v751_v53 }
 0x106   : > { %762 = vrcp.f32 %v373_v51  ;;  %v375_v56 = vadd.f32 1.0, %v753_v54 }
 0x107   : > { %764 = vrcp.f32 %v371_v55 }
 0x108   : > { %766 = vrcp.f32 %v375_v56 }
 0x109   : > { %768 = vrcp.f32 %v376_v57 }
 0x10b   : > { %v755_v58 = vpop.eup %754 }
 0x10c   : > { %v757_v59 = vpop.eup %756  ;;  %v394_v60 = vmul.f32 %v755_v58, %v312_v20  ;;  %v630_v58 = vld [vmem:[%s1086_s2 + $0x1] ss:$0 sm:$0xff] }
 0x10d   : > { %v759_v61 = vpop.eup %758  ;;  %v398_v62 = vmul.f32 %v757_v59, %v332_v21 }
 0x10e   : > { %403 = vadd.xlane.f32.xlu0 %v394_v60  ;;  %v393_v1 = vmul.f32 %v759_v61, %v307_v24 }
 0x10f   : > { %v761_v63 = vpop.eup %760  ;;  %411 = vadd.xlane.f32.xlu1 %v398_v62 }
 0x110   : > { %v396_v0 = vmul.f32 %v761_v63, %v322_v32  ;;  %v763_v2 = vpop.eup %762 }
 0x111   : > { %v765_v3 = vpop.eup %764  ;;  %v397_v4 = vmul.f32 %v763_v2, %v958_v25 }
 0x112   : > { %401 = vadd.xlane.f32.xlu0 %v393_v1  ;;  %v767_v5 = vpop.eup %766  ;;  %v395_v6 = vmul.f32 %v765_v3, %v317_v36  ;;  %v631_v3 = vld [vmem:[%s1086_s2 + $0x2] ss:$0 sm:$0xff] }
 0x113   : > { %407 = vadd.xlane.f32.xlu1 %v396_v0  ;;  %v769_v7 = vpop.eup %768  ;;  %v399_v8 = vmul.f32 %v767_v5, %v337_v37 }
 0x114   : > { %v400_v9 = vmul.f32 %v769_v7, %v342_v33 }
 0x116   : > { %409 = vadd.xlane.f32.xlu0 %v397_v4 }
 0x117   : > { %405 = vadd.xlane.f32.xlu1 %v395_v6 }
 0x11a   : > { %413 = vadd.xlane.f32.xlu0 %v399_v8 }
 0x11b   : > { %415 = vadd.xlane.f32.xlu1 %v400_v9 }
 0x19b   : > { %v404_v10 = vpop.xlane.xlu0 %403 }
 0x19c   : > { %v412_v11 = vpop.xlane.xlu1 %411  ;;  %v419_v12 = vmul.f32 0.0078125, %v404_v10 }
 0x19d   : > { %v423_v13 = vmul.f32 0.0078125, %v412_v11 }
 0x19e   : > { %v962_v14 = vsub.f32 %v394_v60, %v419_v12 }
 0x19f   : > { %v402_v15 = vpop.xlane.xlu0 %401  ;;  %v964_v16 = vsub.f32 %v398_v62, %v423_v13 }
 0x1a0   : > { %v408_v17 = vpop.xlane.xlu1 %407  ;;  %v418_v18 = vmul.f32 0.0078125, %v402_v15  ;;  %v435_v19 = vmul.f32 %v962_v14, %v962_v14 }
 0x1a1   : > { %v421_v20 = vmul.f32 0.0078125, %v408_v17  ;;  %v439_v26 = vmul.f32 %v964_v16, %v964_v16 }
 0x1a2   : > { %v968_v21 = vsub.f32 %v393_v1, %v418_v18  ;;  %444 = vadd.xlane.f32.xlu1 %v435_v19 }
 0x1a3   : > { %v410_v22 = vpop.xlane.xlu0 %409  ;;  %v970_v23 = vsub.f32 %v396_v0, %v421_v20 }
 0x1a4   : > { %v406_v24 = vpop.xlane.xlu1 %405  ;;  %v422_v25 = vmul.f32 0.0078125, %v410_v22  ;;  %v434_v27 = vmul.f32 %v968_v21, %v968_v21 }
 0x1a5   : > { %v420_v28 = vmul.f32 0.0078125, %v406_v24  ;;  %v437_v34 = vmul.f32 %v970_v23, %v970_v23 }
 0x1a6   : > { %v976_v29 = vsub.f32 %v397_v4, %v422_v25  ;;  %452 = vadd.xlane.f32.xlu1 %v439_v26  ;;  %442 = vadd.xlane.f32.xlu0 %v434_v27 }
 0x1a7   : > { %v414_v30 = vpop.xlane.xlu0 %413  ;;  %v978_v31 = vsub.f32 %v395_v6, %v420_v28 }
 0x1a8   : > { %v416_v32 = vpop.xlane.xlu1 %415  ;;  %v424_v33 = vmul.f32 0.0078125, %v414_v30  ;;  %v438_v35 = vmul.f32 %v976_v29, %v976_v29 }
 0x1a9   : > { %v425_v36 = vmul.f32 0.0078125, %v416_v32  ;;  %v436_v39 = vmul.f32 %v978_v31, %v978_v31 }
 0x1aa   : > { %448 = vadd.xlane.f32.xlu1 %v437_v34  ;;  %450 = vadd.xlane.f32.xlu0 %v438_v35  ;;  %v986_v38 = vsub.f32 %v399_v8, %v424_v33 }
 0x1ab   : > { %v984_v37 = vsub.f32 %v400_v9, %v425_v36 }
 0x1ac   : > { %v440_v41 = vmul.f32 %v986_v38, %v986_v38 }
 0x1ad   : > { %v441_v40 = vmul.f32 %v984_v37, %v984_v37 }
 0x1ae   : > { %446 = vadd.xlane.f32.xlu0 %v436_v39 }
 0x1af   : > { %456 = vadd.xlane.f32.xlu1 %v441_v40 }
 0x1b2   : > { %454 = vadd.xlane.f32.xlu0 %v440_v41 }
 0x22f   : > { %v445_v42 = vpop.xlane.xlu1 %444 }
 0x230   : > { %v459_v43 = vmul.f32 0.0078125, %v445_v42 }
 0x232   : > { %v467_v44 = vadd.f32 1e-05, %v459_v43 }
 0x233   : > { %v453_v45 = vpop.xlane.xlu1 %452  ;;  %v443_v46 = vpop.xlane.xlu0 %442 }
 0x234   : > { %770 = vrsqrt.f32 %v467_v44  ;;  %v463_v47 = vmul.f32 0.0078125, %v453_v45  ;;  %v458_v48 = vmul.f32 0.0078125, %v443_v46 }
 0x236   : > { %v471_v49 = vadd.f32 1e-05, %v463_v47  ;;  %v466_v50 = vadd.f32 1e-05, %v458_v48 }
 0x237   : > { %v449_v51 = vpop.xlane.xlu1 %448  ;;  %v451_v52 = vpop.xlane.xlu0 %450 }
 0x238   : > { %772 = vrsqrt.f32 %v471_v49  ;;  %v461_v53 = vmul.f32 0.0078125, %v449_v51  ;;  %v462_v54 = vmul.f32 0.0078125, %v451_v52 }
 0x239   : > { %774 = vrsqrt.f32 %v466_v50 }
 0x23a   : > { %v469_v55 = vadd.f32 1e-05, %v461_v53  ;;  %v470_v56 = vadd.f32 1e-05, %v462_v54 }
 0x23b   : > { %v447_v57 = vpop.xlane.xlu0 %446 }
 0x23c   : > { %776 = vrsqrt.f32 %v469_v55  ;;  %v457_v59 = vpop.xlane.xlu1 %456  ;;  %v460_v60 = vmul.f32 0.0078125, %v447_v57 }
 0x23d   : > { %778 = vrsqrt.f32 %v470_v56  ;;  %v465_v61 = vmul.f32 0.0078125, %v457_v59 }
 0x23e   : > { %v771_v62 = vpop.eup %770  ;;  %v468_v63 = vadd.f32 1e-05, %v460_v60 }
 0x23f   : > { %v488_v0 = vmul.f32 %v771_v62, %v630_v58  ;;  %v473_v1 = vadd.f32 1e-05, %v465_v61  ;;  %v455_v2 = vpop.xlane.xlu0 %454 }
 0x240   : > { %780 = vrsqrt.f32 %v468_v63  ;;  %v464_v4 = vmul.f32 0.0078125, %v455_v2 }
 0x241   : > { %v496_v5 = vmul.f32 %v488_v0, %v962_v14  ;;  %782 = vrsqrt.f32 %v473_v1 }
 0x242   : > { %v773_v6 = vpop.eup %772  ;;  %v472_v7 = vadd.f32 1e-05, %v464_v4 }
 0x243   : > { %v775_v8 = vpop.eup %774  ;;  %v509_v9 = vadd.f32 %v631_v3, %v496_v5  ;;  %v492_v10 = vmul.f32 %v773_v6, %v630_v58 }
 0x244   : > { %v487_v11 = vmul.f32 %v775_v8, %v630_v58  ;;  %784 = vrsqrt.f32 %v472_v7 }
 0x245   : > { %517 = vst [vmem:[%s1004_s6 + $0x8] sm:$0xff] %v509_v9  ;;  %v500_v12 = vmul.f32 %v492_v10, %v964_v16 }
 0x246   : > { %v777_v13 = vpop.eup %776  ;;  %v495_v15 = vmul.f32 %v487_v11, %v968_v21 }
 0x247   : > { %v779_v14 = vpop.eup %778  ;;  %v513_v17 = vadd.f32 %v631_v3, %v500_v12  ;;  %v490_v18 = vmul.f32 %v777_v13, %v630_v58 }
 0x248   : > { %v508_v19 = vadd.f32 %v631_v3, %v495_v15  ;;  %v491_v20 = vmul.f32 %v779_v14, %v630_v58 }
 0x249   : > { %521 = vst [vmem:[%s1004_s6 + $0x28] sm:$0xff] %v513_v17  ;;  %v498_v22 = vmul.f32 %v490_v18, %v970_v23 }
 0x24a   : > { %v781_v24 = vpop.eup %780  ;;  %516 = vst [vmem:[%s1004_s6] sm:$0xff] %v508_v19  ;;  %v499_v25 = vmul.f32 %v491_v20, %v976_v29 }
 0x24b   : > { %v783_v16 = vpop.eup %782  ;;  %v511_v26 = vadd.f32 %v631_v3, %v498_v22  ;;  %v489_v21 = vmul.f32 %v781_v24, %v630_v58 }
 0x24c   : > { %v512_v27 = vadd.f32 %v631_v3, %v499_v25  ;;  %v494_v28 = vmul.f32 %v783_v16, %v630_v58 }
 0x24d   : > { %519 = vst [vmem:[%s1004_s6 + $0x18] sm:$0xff] %v511_v26  ;;  %v497_v30 = vmul.f32 %v489_v21, %v978_v31 }
 0x24e   : > { %v785_v32 = vpop.eup %784  ;;  %520 = vst [vmem:[%s1004_s6 + $0x20] sm:$0xff] %v512_v27  ;;  %v502_v23 = vmul.f32 %v494_v28, %v984_v37 }
 0x24f   : > { %v510_v33 = vadd.f32 %v631_v3, %v497_v30  ;;  %v493_v34 = vmul.f32 %v785_v32, %v630_v58  ;;  %531 = sbr.rel (!%p911_p5) target bundleno = 626 (0x272), region = 36 }
 0x250   : > { %v515_v35 = vadd.f32 %v631_v3, %v502_v23 }
 0x251   : > { %518 = vst [vmem:[%s1004_s6 + $0x10] sm:$0xff] %v510_v33  ;;  %v501_v29 = vmul.f32 %v493_v34, %v986_v38 }
 0x252   : > { %523 = vst [vmem:[%s1004_s6 + $0x38] sm:$0xff] %v515_v35 }
 0x253   : > { %v514_v36 = vadd.f32 %v631_v3, %v501_v29 }
 0x255   : > { %522 = vst [vmem:[%s1004_s6 + $0x30] sm:$0xff] %v514_v36 }
 0x256   : > { %s1095_s8 = smov (!%p534_p11, %s533_s8), 8 }
 0x257   : > { %s1028_s9 = sshll.u32 %s1095_s8, 7 }
 0x258   : > { %s538_s10 = ssub.s32 1024, %s1028_s9 }
 0x259   : > { %539 = vsyncadd %s1023_s7, %s538_s10  ;;  %p635_p12 = scmp.ne.s32.totalorder %s1028_s9, 0  ;;  %s641_s11 = sshll.u32 %s894_s16, 10 }
 0x25a   : > { %s1037_s19 = scalar_lea.hbm %s1087_s3, %s641_s11  ;;  %s544_s30 = sshll.u32 %s1004_s6, 4  ;;  %s1040_s30 = int_to_ptr.vmem [resolvable:$true] %s544_s30 }
 0x25b   : > { %s786_s20 = scalar_lea.vmem %s1040_s30, %s1028_s9  ;;  %s850_s24 = smov [#allocation2]  }
 0x25c   : > { %p787_p13 = scmp.ne.s32.totalorder %s1040_s30, %s786_s20  ;;  %s790_s25 = sshll.u32 %s850_s24, 4  ;;  %s791_s25 = int_to_ptr.vmem [resolvable:$false] %s790_s25 }
 0x25d   : > { %s792_s16 = scalar_lea.vmem %s791_s25, 2048  ;;  %p793_p2 = scmp.lt.s32.totalorder %s1040_s30, %s791_s25 }
 0x25e   : > { %p788_p0 = pnand %p787_p13, %p635_p12  ;;  %p794_p3 = scmp.lt.s32.totalorder %s792_s16, %s786_s20 }
 0x260   : > { %p789_p1 = pneg %p788_p0  ;;  %p795_p4 = por %p794_p3, %p793_p2 }
 0x262   : > { %p796_p5 = pnand %p795_p4, %p789_p1 }
 0x264   : > { %799 = shalt.err (!%p796_p5)
}
 0x265   : > { %s800_s26 = scalar_lea.hbm %s1037_s19, %s1028_s9  ;;  %s804_s29 = scalar_lea.hbm %s1087_s3, 3200 }
 0x266   : > { %p801_p7 = scmp.ne.s32.totalorder %s1037_s19, %s800_s26  ;;  %p805_p10 = scmp.lt.u32.totalorder %s1037_s19, %s1087_s3 }
 0x267   : > { %p806_p11 = scmp.lt.u32.totalorder %s804_s29, %s800_s26  ;;  %p808_p0 = scmp.lt.u32.totalorder %s800_s26, %s1037_s19 }
 0x268   : > { %p802_p8 = pnand %p801_p7, %p635_p12 }
 0x269   : > { %p807_p13 = por %p806_p11, %p805_p10 }
 0x26a   : > { %p803_p9 = pneg %p802_p8 }
 0x26b   : > { %p809_p1 = por %p808_p0, %p807_p13 }
 0x26d   : > { %p810_p2 = pnand %p809_p1, %p803_p9 }
 0x26f   : > { %813 = shalt.err (!%p810_p2)
}
 0x270   : > { %s851_s6 = smov 128   ;;  %s852_s8 = smov 8  }
 0x271   : > { %550 = dma.vmem_to_hbm [thread:$0]  (%p635_p12), %s1040_s30, %s1028_s9, %s1037_s19, %s1023_s7, %s851_s6, %s851_s6, %s852_s8  }
 0x272 PF: > { %p703_p3 = scmp.ge.s32.totalorder %s848_s15, 2  ;;  %s559_s10 = sand.u32 1, %s836_s12  }
 0x273   : > { %s560_s11 = scalar_lea.sflag [#allocation3], %s559_s10 }
 0x274   : > { %p700_p4 = pnand %p703_p3, %p915_p6 }
 0x276   : > { %831 = dma.done.wait (!%p700_p4), %s560_s11, 1024  }
 0x277   : > { %833 = vsyncadd (!%p700_p4), %s560_s11, 4294966272  ;;  %p13_p5 = scmp.ge.s32.totalorder %s898_s18, 6   ;;  %s1090_s12 = smov %s840_s13 }
 0x278   : > { %s1091_s13 = smov %s844_s14  ;;  %s1092_s14 = smov %s909_s21 }
 0x279   : > { %s1093_s15 = smov %s898_s18  ;;  %15 = sbr.rel (!%p13_p5) target bundleno = 3 (0x3), region = 67 }
 0x280   :  { %565 = vsyncpa [#allocation3], 1 }
 0x281   :  { %567 = vsyncpa [#allocation3 + $0x1], 1 }

</bundles_post_ra>
